<compile_context>
chip_gen: v6e
topology: v6e:2x2x1
jax: 0.10.0
libtpu: 0.0.40
codegen_flags: <defaults>
</compile_context>

<pallas_src>
import functools

import jax
import jax.numpy as jnp
from jax.experimental import pallas as pl
from jax.experimental.pallas import tpu as pltpu


def _round_up(x: int, m: int) -> int:
    return ((x + m - 1) // m) * m


def _cdiv(a: int, b: int) -> int:
    return -(-a // b)


def _lane_pad(d: int) -> int:
    # Lane-pad only dims that already span at least one lane; smaller dims rely on the
    # "block dim == full array dim" exception, so tiny models never pay 8x HBM traffic.
    return _round_up(d, 128) if d >= 128 else d


def bp_mlp_kernel(x_ref, w1_ref, b1_ref, w2_ref, b2_ref, o_ref):
    # x loaded in its native dtype, cast to the MXU operand dtype in-register (no extra
    # wrapper-side HBM pad/cast pass over x).
    x = x_ref[...].astype(w1_ref.dtype)
    # hidden = sigmoid(x @ W1 + b1): MXU matmul, f32 accumulate, f32 bias + sigmoid (EUP).
    h = jnp.dot(x, w1_ref[...], preferred_element_type=jnp.float32)
    h = jax.nn.sigmoid(h + b1_ref[...])            # b1 is (1, H) -> broadcast over rows
    # out = sigmoid(hidden @ W2 + b2)
    o = jnp.dot(h.astype(w2_ref.dtype), w2_ref[...], preferred_element_type=jnp.float32)
    o = jax.nn.sigmoid(o + b2_ref[...])            # b2 is (1, O)
    o_ref[...] = o.astype(o_ref.dtype)


def prepare_params(w1, b1, w2, b2, *, compute_dtype=jnp.bfloat16):
    """One-time (init-time) pad + cast of the constant parameters.

    Weight feature dims are zero-padded to lane multiples only when >= 128.  Zero padding
    is exact for Linear layers: padded hidden units (sigmoid(0)=0.5) only multiply zero
    W2 rows and padded output columns are sliced off by the wrapper.  Biases stay f32.
    """
    in_size, hidden = w1.shape
    out_size = w2.shape[1]
    I, H, O = _lane_pad(in_size), _lane_pad(hidden), _lane_pad(out_size)
    w_dtype = w1.dtype if compute_dtype is None else compute_dtype
    w1_p = jnp.pad(w1, ((0, I - in_size), (0, H - hidden))).astype(w_dtype)
    b1_p = jnp.pad(jnp.reshape(b1, (1, -1)), ((0, 0), (0, H - hidden))).astype(jnp.float32)
    w2_p = jnp.pad(w2, ((0, H - hidden), (0, O - out_size))).astype(w_dtype)
    b2_p = jnp.pad(jnp.reshape(b2, (1, -1)), ((0, 0), (0, O - out_size))).astype(jnp.float32)
    return w1_p, b1_p, w2_p, b2_p


@functools.partial(jax.jit,
                   static_argnames=("out_features", "block_batch", "vmem_limit_bytes"))
def bp_network_forward(x, w1, b1, w2, b2, *, out_features=None,
                       block_batch=256, vmem_limit_bytes=None):
    """x: (B, in). w1/b1/w2/b2 come from prepare_params (or raw f32). -> (B, out_features)."""
    batch, x_in = x.shape
    I, H = w1.shape
    O = w2.shape[1]
    if out_features is None:
        out_features = O
    if x_in > I:
        raise ValueError(f"x has {x_in} features but w1 expects at most {I}")
    out_dtype = x.dtype
    x_item = jnp.dtype(x.dtype).itemsize
    w_item = jnp.dtype(w1.dtype).itemsize

    # ---- Even batch tiling: bounded pad waste, sublane-aligned, >=2 tiles when splittable. ----
    sub = 16 if min(x_item, w_item) < 4 else 8
    n = max(1, _cdiv(batch, block_batch))
    tb = _round_up(_cdiv(batch, n), sub)
    if n == 1 and batch > sub:
        # Keep v7x's second TensorCore busy (harmless ~0.35us extra step on 1-TC chips).
        n = 2
        tb = _round_up(_cdiv(batch, n), sub)
    B = n * tb

    if (B != batch) or (I != x_in):
        x = jnp.pad(x, ((0, B - batch), (0, I - x_in)))

    # ---- VMEM budget from the actual working set (weights single-buffered). ----
    if vmem_limit_bytes is None:
        work = (
            2 * tb * I * x_item                               # double-buffered x tiles
            + 2 * tb * O * x_item                             # double-buffered out tiles
            + (I * H + H * O) * w_item                        # resident weights (1 buffer)
            + (H + O) * 4                                     # resident f32 biases
            + tb * (H + O) * 4                                # f32 hidden + pre-sigmoid out
            + (tb * (I + H) * w_item if w_item < 4 else 0)    # in-kernel cast copies
        )
        vmem_limit = min(max(int(1.3 * work) + (2 << 20), 16 << 20), 64 << 20)
    else:
        vmem_limit = vmem_limit_bytes

    def resident(shape):
        # Constant index_map -> block never changes; single buffer is enough.
        return pl.BlockSpec(shape, lambda i: (0, 0), pipeline_mode=pl.Buffered(1))

    in_specs = [
        pl.BlockSpec((tb, I), lambda i: (i, 0)),   # streamed batch tile of x
        resident((I, H)),                          # W1 resident in VMEM
        resident((1, H)),                          # b1
        resident((H, O)),                          # W2
        resident((1, O)),                          # b2
    ]
    out_specs = pl.BlockSpec((tb, O), lambda i: (i, 0))

    cost = pl.CostEstimate(
        flops=2 * batch * (I * H + H * O),
        transcendentals=batch * (H + O),
        bytes_accessed=(B * I + B * O) * x_item + (I * H + H * O) * w_item + (H + O) * 4,
    )

    out_padded = pl.pallas_call(
        bp_mlp_kernel,
        out_shape=jax.ShapeDtypeStruct((B, O), out_dtype),
        grid=(n,),
        in_specs=in_specs,
        out_specs=out_specs,
        compiler_params=pltpu.CompilerParams(
            dimension_semantics=("parallel",),     # batch axis -> both TCs on v7x
            vmem_limit_bytes=vmem_limit,
        ),
        cost_estimate=cost,
    )(x, w1, b1, w2, b2)

    return out_padded[:batch, :out_features]


def init_params(key, input_size, hidden_size, output_size, dtype=jnp.float32):
    """Xavier-uniform weights (same as torch.nn.init.xavier_uniform_), zero biases."""
    k1, k2 = jax.random.split(key)

    def xavier(k, fan_in, fan_out):
        bound = jnp.sqrt(6.0 / (fan_in + fan_out)).astype(dtype)
        return jax.random.uniform(k, (fan_in, fan_out), dtype, -bound, bound)

    w1 = xavier(k1, input_size, hidden_size)
    b1 = jnp.zeros((1, hidden_size), dtype)
    w2 = xavier(k2, hidden_size, output_size)
    b2 = jnp.zeros((1, output_size), dtype)
    return w1, b1, w2, b2


def reference_forward(x, w1, b1, w2, b2):
    h = jax.nn.sigmoid(x @ w1 + b1)
    return jax.nn.sigmoid(h @ w2 + b2)


if __name__ == "__main__":
    key = jax.random.PRNGKey(0)
    batch, input_size, hidden_size, output_size = 8, 16, 32, 4

    kx, kp = jax.random.split(key)
    x = jax.random.normal(kx, (batch, input_size), jnp.float32)
    w1, b1, w2, b2 = init_params(kp, input_size, hidden_size, output_size)
    ref = reference_forward(x, w1, b1, w2, b2)

    # f32 MXU operands: bit-tight check at toy shapes.
    params_f32 = prepare_params(w1, b1, w2, b2, compute_dtype=jnp.float32)
    out_f32 = jax.block_until_ready(
        bp_network_forward(x, *params_f32, out_features=output_size))
    assert out_f32.shape == (batch, output_size)
    err32 = float(jnp.max(jnp.abs(out_f32 - ref)))
    assert jnp.allclose(out_f32, ref, atol=1e-5, rtol=1e-5), err32

    # bf16 MXU operands (default; native MXU dtype on v6e/v7x), f32 accumulate + sigmoid.
    params_bf16 = prepare_params(w1, b1, w2, b2)
    out_bf16 = jax.block_until_ready(
        bp_network_forward(x, *params_bf16, out_features=output_size))
    assert out_bf16.shape == (batch, output_size)
    err_bf = float(jnp.max(jnp.abs(out_bf16 - ref)))
    assert jnp.allclose(out_bf16, ref, atol=2e-2, rtol=2e-2), err_bf

    print("KERNEL_OK")
</pallas_src>

<mosaic_0001>
module attributes {stable_mosaic.version = 11 : i64} {
  func.func @bp_mlp_kernel(%arg0: i32, %arg1: memref<8x16xf32, #tpu.memory_space<vmem>>, %arg2: memref<16x32xf32, #tpu.memory_space<vmem>>, %arg3: memref<1x32xf32, #tpu.memory_space<vmem>>, %arg4: memref<32x4xf32, #tpu.memory_space<vmem>>, %arg5: memref<1x4xf32, #tpu.memory_space<vmem>>, %arg6: memref<8x4xf32, #tpu.memory_space<vmem>>) attributes {dimension_semantics = [#tpu.dimension_semantics<parallel>], iteration_bounds = array<i64: 1>, scalar_prefetch = 0 : i64, scratch_operands = 0 : i64, tpu.core_type = #tpu.core_type<tc>, window_params = [{transform_indices = @transform_0, window_bounds = array<i64: 8, 16>}, {pipeline_mode = #tpu.pipeline_mode<synchronous>, transform_indices = @transform_1, window_bounds = array<i64: 16, 32>}, {pipeline_mode = #tpu.pipeline_mode<synchronous>, transform_indices = @transform_2, window_bounds = array<i64: 1, 32>}, {pipeline_mode = #tpu.pipeline_mode<synchronous>, transform_indices = @transform_3, window_bounds = array<i64: 32, 4>}, {pipeline_mode = #tpu.pipeline_mode<synchronous>, transform_indices = @transform_4, window_bounds = array<i64: 1, 4>}, {transform_indices = @transform_5, window_bounds = array<i64: 8, 4>}]} {
    %c0 = arith.constant 0 : index
    %c0_0 = arith.constant 0 : index
    %0 = vector.load %arg1[%c0, %c0_0] : memref<8x16xf32, #tpu.memory_space<vmem>>, vector<8x16xf32>
    %c0_1 = arith.constant 0 : index
    %c0_2 = arith.constant 0 : index
    %1 = vector.load %arg2[%c0_1, %c0_2] : memref<16x32xf32, #tpu.memory_space<vmem>>, vector<16x32xf32>
    %cst = arith.constant dense<0.000000e+00> : vector<8x32xf32>
    %2 = tpu.matmul %0, %1, %cst {dimension_numbers = #tpu.dot_dimension_numbers<[1], [0], [0], [1], [0, 0, 1, 1], [], []>} : vector<8x16xf32>, vector<16x32xf32>, vector<8x32xf32> -> vector<8x32xf32>
    %c0_3 = arith.constant 0 : index
    %c0_4 = arith.constant 0 : index
    %3 = vector.load %arg3[%c0_3, %c0_4] : memref<1x32xf32, #tpu.memory_space<vmem>>, vector<1x32xf32>
    %4 = vector.broadcast %3 : vector<1x32xf32> to vector<8x32xf32>
    %5 = arith.addf %2, %4 : vector<8x32xf32>
    %6 = arith.negf %5 : vector<8x32xf32>
    %7 = math.exp %6 : vector<8x32xf32>
    %cst_5 = arith.constant 1.000000e+00 : f32
    %8 = vector.broadcast %cst_5 : f32 to vector<8x32xf32>
    %9 = arith.addf %8, %7 : vector<8x32xf32>
    %10 = arith.divf %8, %9 : vector<8x32xf32>
    %c0_6 = arith.constant 0 : index
    %c0_7 = arith.constant 0 : index
    %11 = vector.load %arg4[%c0_6, %c0_7] : memref<32x4xf32, #tpu.memory_space<vmem>>, vector<32x4xf32>
    %cst_8 = arith.constant dense<0.000000e+00> : vector<8x4xf32>
    %12 = tpu.matmul %10, %11, %cst_8 {dimension_numbers = #tpu.dot_dimension_numbers<[1], [0], [0], [1], [0, 0, 1, 1], [], []>} : vector<8x32xf32>, vector<32x4xf32>, vector<8x4xf32> -> vector<8x4xf32>
    %c0_9 = arith.constant 0 : index
    %c0_10 = arith.constant 0 : index
    %13 = vector.load %arg5[%c0_9, %c0_10] : memref<1x4xf32, #tpu.memory_space<vmem>>, vector<1x4xf32>
    %14 = vector.broadcast %13 : vector<1x4xf32> to vector<8x4xf32>
    %15 = arith.addf %12, %14 : vector<8x4xf32>
    %16 = arith.negf %15 : vector<8x4xf32>
    %17 = math.exp %16 : vector<8x4xf32>
    %cst_11 = arith.constant 1.000000e+00 : f32
    %18 = vector.broadcast %cst_11 : f32 to vector<8x4xf32>
    %19 = arith.addf %18, %17 : vector<8x4xf32>
    %20 = arith.divf %18, %19 : vector<8x4xf32>
    %c0_12 = arith.constant 0 : index
    %c0_13 = arith.constant 0 : index
    %21 = vector.load %arg6[%c0_12, %c0_13] : memref<8x4xf32, #tpu.memory_space<vmem>>, vector<8x4xf32>
    tpu.vector_store %arg6[%c0_12, %c0_13], %20 {strides = array<i32>} : memref<8x4xf32, #tpu.memory_space<vmem>>, vector<8x4xf32>,
    return
  }
  func.func @transform_0(%arg0: i32) -> (i32, i32) {
    %c0_i32 = arith.constant 0 : i32
    %c0_i32_0 = arith.constant 0 : i32
    return %arg0, %c0_i32 : i32, i32
  }
  func.func @transform_1(%arg0: i32) -> (i32, i32) {
    %c0_i32 = arith.constant 0 : i32
    %c0_i32_0 = arith.constant 0 : i32
    %c0_i32_1 = arith.constant 0 : i32
    return %c0_i32, %c0_i32_0 : i32, i32
  }
  func.func @transform_2(%arg0: i32) -> (i32, i32) {
    %c0_i32 = arith.constant 0 : i32
    %c0_i32_0 = arith.constant 0 : i32
    %c0_i32_1 = arith.constant 0 : i32
    return %c0_i32, %c0_i32_0 : i32, i32
  }
  func.func @transform_3(%arg0: i32) -> (i32, i32) {
    %c0_i32 = arith.constant 0 : i32
    %c0_i32_0 = arith.constant 0 : i32
    %c0_i32_1 = arith.constant 0 : i32
    return %c0_i32, %c0_i32_0 : i32, i32
  }
  func.func @transform_4(%arg0: i32) -> (i32, i32) {
    %c0_i32 = arith.constant 0 : i32
    %c0_i32_0 = arith.constant 0 : i32
    %c0_i32_1 = arith.constant 0 : i32
    return %c0_i32, %c0_i32_0 : i32, i32
  }
  func.func @transform_5(%arg0: i32) -> (i32, i32) {
    %c0_i32 = arith.constant 0 : i32
    %c0_i32_0 = arith.constant 0 : i32
    return %arg0, %c0_i32 : i32, i32
  }
}

</mosaic_0001>

<bundles_post_ra>
// kernel: bp_network_forward.1
= control target key start
LH: loop header
LB: loop body
LE: loop exit
PB: predicated region body
PF: predicated region fallthrough
CT: control target
= control target key end

     0   :  { %v249_v0 = vmov 0.0   ;;  %vm250_vm0 = vmmov 0   ;;  %vm30_vm1 = vcmask 130048   ;;  %vm121_vm2 = vcmask 261120   ;;  %s311_s1 = inlined_call_operand.vmem [shape: f32[16,32], index: 1, kind: input, shape index: {}]   ;;  %s312_s0 = inlined_call_operand.vmem [shape: f32[8,16], index: 0, kind: input, shape index: {}]   ;;  %s313_s3 = inlined_call_operand.vmem [shape: f32[32,4], index: 3, kind: input, shape index: {}]   ;;  %s314_s2 = inlined_call_operand.vmem [shape: f32[1,32], index: 2, kind: input, shape index: {}]   ;;  %s315_s4 = inlined_call_operand.vmem [shape: f32[1,4], index: 4, kind: input, shape index: {}]   ;;  %s316_s5 = inlined_call_operand.vmem [shape: f32[8,4], index: 5, kind: output, shape index: {}]  }
   0x1   :  { %221 = vmatprep.subr.mxu0 %v249_v0  ;;  %v22_v1 = vld [vmem:[%s311_s1 + $0x8] sm:$0xff]  ;;  %v21_v2 = vld [vmem:[%s311_s1] sm:$0xff]  ;;  %225 = vmatprep.mubr.msk.f32.mxu0 %vm250_vm0, %v249_v0  ;;  %v113_v4 = vld [vmem:[%s313_s3 + $0x18] sm:$0xff]  ;;  %vm201_vm3 = vcmask 31744  }
   0x2   :  { %222 = vmatpush3.msra.mxu0 %v22_v1  ;;  %v20_v3 = vld [vmem:[%s312_s0] sm:$0xff]  ;;  %228 = vmatprep.subr.mxu1 %v249_v0  ;;  %v112_v5 = vld [vmem:[%s313_s3 + $0x10] sm:$0xff]  ;;  %v111_v6 = vld [vmem:[%s313_s3 + $0x8] sm:$0xff] }
   0x3   :  { %223 = vmatprep.subr.mxu0 %v249_v0  ;;  %236 = vmatprep.mubr.msk.f32.mxu1 %vm250_vm0, %v249_v0  ;;  %v110_v7 = vld [vmem:[%s313_s3] sm:$0xff] }
   0x4   :  { %224 = vmatpush3.msra.mxu0 %v21_v2  ;;  %229 = vmatpush3.msra.mxu1 %v113_v4  ;;  %v207_v8 = vld [vmem:[%s314_s2] ss:$0 sm:$0xff] }
   0x5   :  { %226 = vmatmul.mubr.msk.f32.vlgmr.msra.gmra.mxu0 %vm30_vm1, %v20_v3  ;;  %230 = vmatprep.subr.mxu1 %v249_v0  ;;  %v210_v16 = vld [vmem:[%s315_s4] ss:$0 sm:$0xff] }
   0x6   :  { %231 = vmatpush3.msra.mxu1 %v112_v5 }
   0x7   :  { %232 = vmatprep.subr.mxu1 %v249_v0 }
   0x8   :  { %233 = vmatpush3.msra.mxu1 %v111_v6 }
   0x9   :  { %234 = vmatprep.subr.mxu1 %v249_v0 }
   0xa   :  { %235 = vmatpush3.msra.mxu1 %v110_v7 }
  0xc5   :  { %v100_v9 = vpop.f32.mrf.mxu0 }
  0xc6   :  { %v101_v10 = vadd.f32 %v207_v8, %v100_v9 }
  0xc7   :  { %v227_v11 = vpop.f32.mrf.mxu0 }
  0xc8   :  { %v209_v12 = vmul.f32 -1.442695, %v101_v10 }
  0xca   :  { %241 = vpow2.f32 %v209_v12 }
  0xd7   :  { %v242_v13 = vpop.eup %241 }
  0xd8   :  { %v107_v14 = vadd.f32 1.0, %v242_v13 }
  0xda   :  { %243 = vrcp.f32 %v107_v14 }
  0xe7   :  { %v244_v15 = vpop.eup %243 }
  0xe8   :  { %237 = vmatmul.mubr.msk.f32.vlgmr.msra.gmra.mxu1 %vm121_vm2, %v244_v15 }
 0x1a8   :  { %v191_v17 = vpop.f32.mrf.mxu1 }
 0x1a9   :  { %v192_v18 = vadd.f32 %v210_v16, %v191_v17 }
 0x1aa   :  { %v238_v19 = vpop.f32.mrf.mxu1 }
 0x1ab   :  { %v212_v20 = vmul.f32 -1.442695, %v192_v18 }
 0x1ad   :  { %245 = vpow2.f32 %v212_v20 }
 0x1ba   :  { %v246_v21 = vpop.eup %245 }
 0x1bb   :  { %v198_v22 = vadd.f32 1.0, %v246_v21 }
 0x1bd   :  { %247 = vrcp.f32 %v198_v22 }
 0x1ca   :  { %v248_v23 = vpop.eup %247 }
 0x1cb   :  { %202 = vst.msk [vmem:[%s316_s5] sm:$0xff] %vm201_vm3, %v248_v23 }

</bundles_post_ra>
